<compile_context>
chip_gen: v7x
topology: tpu7x:2x2x1
jax: 0.10.0
libtpu: 0.0.40
codegen_flags: <defaults>
</compile_context>

<pallas_src>
import jax
import jax.numpy as jnp
from jax.experimental import pallas as pl
from jax.experimental.pallas import tpu as pltpu

_MIB = 1024 * 1024


def _mish(h):
    # Mish(x) = x * tanh(softplus(x)); PyTorch softplus threshold (20) for
    # numerical stability, with a min-guard so exp never sees huge inputs.
    sp = jnp.where(h > 20.0, h, jnp.log1p(jnp.exp(jnp.minimum(h, 20.0))))
    return h * jnp.tanh(sp)


# ---------------------------------------------------------------------------
# Kernels
# ---------------------------------------------------------------------------
def time_embedding_kernel(x_ref, w1_ref, b1_ref, w2_ref, b2_ref, o_ref):
    """Fused single-block kernel: everything VMEM-resident, no grid."""
    x = x_ref[...]                                   # (B, 1) f32
    h = x * w1_ref[...] + b1_ref[...]                # outer product on the VPU
    m = _mish(h)                                     # EUP transcendentals, f32
    y = jnp.dot(m.astype(w2_ref.dtype), w2_ref[...],
                preferred_element_type=jnp.float32) + b2_ref[...]
    o_ref[...] = y.astype(o_ref.dtype)


def mish_stage_kernel(x_ref, w1_ref, b1_ref, m_ref):
    """Tiled path stage 1: m = Mish(x @ w1 + b1), cast once to the MXU dtype."""
    h = x_ref[...] * w1_ref[...] + b1_ref[...]
    m_ref[...] = _mish(h).astype(m_ref.dtype)


def tiled_matmul_kernel(m_ref, w2_ref, b2_ref, o_ref):
    """Tiled path stage 2: per-column-tile o = m @ w2[:, tile] + b2[:, tile]."""
    y = jnp.dot(m_ref[...], w2_ref[...],
                preferred_element_type=jnp.float32) + b2_ref[...]
    o_ref[...] = y.astype(o_ref.dtype)


# ---------------------------------------------------------------------------
# Wrapper / dispatch
# ---------------------------------------------------------------------------
def _vmem_capacity_bytes():
    try:
        info = pltpu.get_tpu_info()
        cap = getattr(info, "vmem_capacity_bytes", None)
        if cap:
            return int(cap)
    except Exception:
        pass
    return 64 * _MIB  # conservative fallback (v7x-sized VMEM)


def _vmem_limit(need_bytes, cap_bytes):
    # Raise the scoped VMEM limit above the per-generation default (16 MiB on
    # v5e, 32 MiB on v6e/v7x) when needed, leaving headroom below physical.
    limit = max(int(need_bytes * 1.5) + 4 * _MIB, 32 * _MIB)
    return int(min(limit, cap_bytes - 2 * _MIB))


def _pick_tile_n(D, w2_itemsize, vmem_cap, prefer_two_cores):
    """Largest multiple-of-128 divisor of D, capped at 2048, whose
    double-buffered (D, tn) w2 tile stays within ~half the VMEM budget. When
    prefer_two_cores (v7x), keep >= 2 grid steps so both TensorCores get work."""
    target = 2048
    budget = vmem_cap // 2
    best = 128
    for c in range(128, min(D, target) + 1, 128):
        if D % c:
            continue
        if prefer_two_cores and D > 128 and c > D // 2:
            continue
        if 2 * D * c * w2_itemsize > budget:
            continue
        best = max(best, c)
    return best


def time_embedding(x, w1, b1, w2, b2, *, tile_n=None, weights_dtype=jnp.bfloat16):
    """x: (B, 1) f32; w1: (1, D); b1: (1, D); w2: (D, D); b2: (1, D) -> (B, D) f32.

    Weights are (in_features, out_features) — the transpose of PyTorch nn.Linear.
    weights_dtype controls the w2 / activation dtype fed to the MXU (bf16 by
    default to halve the dominant HBM traffic; pass jnp.float32 for exactness).
    tile_n forces the column-tiled path with that tile width.
    """
    B = x.shape[0]
    D = w1.shape[1]

    x = x.astype(jnp.float32)
    w1 = w1.astype(jnp.float32)
    b1 = b1.astype(jnp.float32)
    b2 = b2.astype(jnp.float32)
    w2 = w2.astype(weights_dtype)   # dominant HBM traffic -> bf16 by default
    # TODO(synk): optional w2 quantization (fp8 on v7x, int8 + per-column scale on
    # v5e/v6e MXU) would halve HBM traffic again; kept opt-in via weights_dtype.

    w2_itemsize = jnp.dtype(weights_dtype).itemsize
    w2_bytes = D * D * w2_itemsize
    vmem_cap = _vmem_capacity_bytes()
    # <= 64 MiB VMEM => v7x-like part (2 TensorCores/chip, tight VMEM): prefer the
    # column-tiled "parallel" path so both cores stream w2 concurrently.
    small_vmem = vmem_cap <= 64 * _MIB

    out_shape = jax.ShapeDtypeStruct((B, D), jnp.float32)
    single_block_need = w2_bytes + 4 * B * D * 4 + 4 * D * 4 + 256 * 1024

    if tile_n is None:
        single_block_budget = (24 * _MIB) if small_vmem else (48 * _MIB)
        use_single_block = (
            D % 128 != 0                 # tiled path needs lane-aligned column tiles
            or w2_bytes <= 2 * _MIB      # tiny: per-step grid overhead would dominate
            or (not small_vmem and single_block_need <= single_block_budget)
        )
        # TODO(synk): pad D to a multiple of 128 if a huge, non-aligned D ever shows up.
    else:
        use_single_block = False

    if use_single_block:
        # ---- Single-block path: no grid, no pipelining, one big contiguous DMA.
        vmem = pl.BlockSpec(memory_space=pltpu.MemorySpace.VMEM)
        cost = pl.CostEstimate(
            flops=2 * B * D * D + 8 * B * D,
            transcendentals=3 * B * D,
            bytes_accessed=w2_bytes + B * D * 4 + 3 * D * 4 + B * 4,
        )
        return pl.pallas_call(
            time_embedding_kernel,
            out_shape=out_shape,
            in_specs=[vmem, vmem, vmem, vmem, vmem],
            out_specs=vmem,
            compiler_params=pltpu.CompilerParams(
                vmem_limit_bytes=_vmem_limit(single_block_need, vmem_cap)),
            cost_estimate=cost,
        )(x, w1, b1, w2, b2)

    # ---- Column-tiled path: precompute m once, then stream w2 column tiles. ----
    if tile_n is not None:
        tn = int(tile_n)
        assert D % tn == 0 and tn % 128 == 0, \
            "tile_n must divide D and be a multiple of 128"
    else:
        tn = _pick_tile_n(D, w2_itemsize, vmem_cap, prefer_two_cores=small_vmem)

    # Stage 1: m = Mish(x @ w1 + b1), computed once (NOT per column tile) and cast
    # once to the MXU input dtype. Tiny: (B, D) in weights_dtype.
    vmem = pl.BlockSpec(memory_space=pltpu.MemorySpace.VMEM)
    m = pl.pallas_call(
        mish_stage_kernel,
        out_shape=jax.ShapeDtypeStruct((B, D), weights_dtype),
        in_specs=[vmem, vmem, vmem],
        out_specs=vmem,
        cost_estimate=pl.CostEstimate(
            flops=8 * B * D, transcendentals=3 * B * D,
            bytes_accessed=B * 4 + 2 * D * 4 + B * D * w2_itemsize),
    )(x, w1, b1)

    # Stage 2: stream w2 over output-column tiles. Grid axis "parallel" shards the
    # tiles across the two TensorCores on v7x (harmless on v5e/v6e).
    need = (2 * (D * tn * w2_itemsize)          # double-buffered w2 tile (dominant)
            + 2 * (B * tn * 4 + tn * 4)         # out / b2 tiles
            + 2 * (B * D * w2_itemsize)         # m (constant index map, still buffered)
            + 256 * 1024)
    cost = pl.CostEstimate(
        flops=2 * B * D * D,
        transcendentals=0,
        bytes_accessed=w2_bytes + B * D * w2_itemsize + B * D * 4 + D * 4,
    )
    return pl.pallas_call(
        tiled_matmul_kernel,
        out_shape=out_shape,
        grid=(D // tn,),
        in_specs=[
            pl.BlockSpec((B, D), lambda j: (0, 0)),     # m (whole, precomputed)
            pl.BlockSpec((D, tn), lambda j: (0, j)),    # w2 column tile
            pl.BlockSpec((1, tn), lambda j: (0, j)),    # b2 column tile
        ],
        out_specs=pl.BlockSpec((B, tn), lambda j: (0, j)),
        compiler_params=pltpu.CompilerParams(
            dimension_semantics=("parallel",),
            vmem_limit_bytes=_vmem_limit(need, vmem_cap)),
        cost_estimate=cost,
    )(m, w2, b2)


# ---------------------------------------------------------------------------
# Reference + tests
# ---------------------------------------------------------------------------
def time_embedding_ref(x, w1, b1, w2, b2):
    h = x @ w1 + b1
    sp = jnp.where(h > 20.0, h, jnp.log1p(jnp.exp(jnp.minimum(h, 20.0))))
    m = h * jnp.tanh(sp)
    return m @ w2 + b2


def _make_params(key, B, D):
    kx, k1, kb1, k2, kb2 = jax.random.split(key, 5)
    x = jax.random.uniform(kx, (B, 1), dtype=jnp.float32)
    w1 = jax.random.normal(k1, (1, D), dtype=jnp.float32) * 0.5
    b1 = jax.random.normal(kb1, (1, D), dtype=jnp.float32) * 0.1
    w2 = jax.random.normal(k2, (D, D), dtype=jnp.float32) * (1.0 / jnp.sqrt(D))
    b2 = jax.random.normal(kb2, (1, D), dtype=jnp.float32) * 0.1
    return x, w1, b1, w2, b2


if __name__ == "__main__":
    key = jax.random.PRNGKey(0)
    k_a, k_b = jax.random.split(key)

    # ---- Test 1: small shapes, single-block path (B=8 timesteps, dim=128).
    B, D = 8, 128
    x, w1, b1, w2, b2 = _make_params(k_a, B, D)
    out = jax.block_until_ready(time_embedding(x, w1, b1, w2, b2))
    ref = time_embedding_ref(x, w1, b1, w2, b2)
    assert out.shape == (B, D)
    # bf16 w2 / activations -> relaxed tolerance vs the f32 reference.
    assert jnp.allclose(out, ref, atol=2e-2, rtol=2e-2), "mismatch (single-block)"

    # ---- Test 2: exercise the column-tiled path (forced tn=128 at D=256).
    B2, D2 = 8, 256
    x2, w12, b12, w22, b22 = _make_params(k_b, B2, D2)
    out2 = jax.block_until_ready(
        time_embedding(x2, w12, b12, w22, b22, tile_n=128))
    ref2 = time_embedding_ref(x2, w12, b12, w22, b22)
    assert out2.shape == (B2, D2)
    assert jnp.allclose(out2, ref2, atol=2e-2, rtol=2e-2), "mismatch (tiled)"

    print("KERNEL_OK")
</pallas_src>

<mosaic_0001>
module attributes {stable_mosaic.version = 11 : i64} {
  func.func @time_embedding_kernel(%arg0: memref<8x1xf32, #tpu.memory_space<vmem>>, %arg1: memref<1x128xf32, #tpu.memory_space<vmem>>, %arg2: memref<1x128xf32, #tpu.memory_space<vmem>>, %arg3: memref<128x128xbf16, #tpu.memory_space<vmem>>, %arg4: memref<1x128xf32, #tpu.memory_space<vmem>>, %arg5: memref<8x128xf32, #tpu.memory_space<vmem>>) attributes {dimension_semantics = [], scalar_prefetch = 0 : i64, scratch_operands = 0 : i64, tpu.core_type = #tpu.core_type<tc>} {
    %c0 = arith.constant 0 : index
    %c0_0 = arith.constant 0 : index
    %0 = vector.load %arg0[%c0, %c0_0] : memref<8x1xf32, #tpu.memory_space<vmem>>, vector<8x1xf32>
    %c0_1 = arith.constant 0 : index
    %c0_2 = arith.constant 0 : index
    %1 = vector.load %arg1[%c0_1, %c0_2] : memref<1x128xf32, #tpu.memory_space<vmem>>, vector<1x128xf32>
    %2 = vector.broadcast %0 : vector<8x1xf32> to vector<8x128xf32>
    %3 = vector.broadcast %1 : vector<1x128xf32> to vector<8x128xf32>
    %4 = arith.mulf %2, %3 : vector<8x128xf32>
    %c0_3 = arith.constant 0 : index
    %c0_4 = arith.constant 0 : index
    %5 = vector.load %arg2[%c0_3, %c0_4] : memref<1x128xf32, #tpu.memory_space<vmem>>, vector<1x128xf32>
    %6 = vector.broadcast %5 : vector<1x128xf32> to vector<8x128xf32>
    %7 = arith.addf %4, %6 : vector<8x128xf32>
    %cst = arith.constant 2.000000e+01 : f32
    %8 = vector.broadcast %cst : f32 to vector<8x128xf32>
    %9 = arith.cmpf ogt, %7, %8 : vector<8x128xf32>
    %cst_5 = arith.constant 2.000000e+01 : f32
    %10 = vector.broadcast %cst_5 : f32 to vector<8x128xf32>
    %11 = arith.minimumf %7, %10 : vector<8x128xf32>
    %12 = math.exp %11 : vector<8x128xf32>
    %13 = math.log1p %12 : vector<8x128xf32>
    %14 = arith.select %9, %7, %13 : vector<8x128xi1>, vector<8x128xf32>
    %15 = math.tanh %14 : vector<8x128xf32>
    %16 = arith.mulf %7, %15 : vector<8x128xf32>
    %17 = arith.truncf %16 : vector<8x128xf32> to vector<8x128xbf16>
    %c0_6 = arith.constant 0 : index
    %c0_7 = arith.constant 0 : index
    %18 = vector.load %arg3[%c0_6, %c0_7] : memref<128x128xbf16, #tpu.memory_space<vmem>>, vector<128x128xbf16>
    %cst_8 = arith.constant dense<0.000000e+00> : vector<8x128xf32>
    %19 = tpu.matmul %17, %18, %cst_8 {dimension_numbers = #tpu.dot_dimension_numbers<[1], [0], [0], [1], [0, 0, 1, 1], [], []>} : vector<8x128xbf16>, vector<128x128xbf16>, vector<8x128xf32> -> vector<8x128xf32>
    %c0_9 = arith.constant 0 : index
    %c0_10 = arith.constant 0 : index
    %20 = vector.load %arg4[%c0_9, %c0_10] : memref<1x128xf32, #tpu.memory_space<vmem>>, vector<1x128xf32>
    %21 = vector.broadcast %20 : vector<1x128xf32> to vector<8x128xf32>
    %22 = arith.addf %19, %21 : vector<8x128xf32>
    %c0_11 = arith.constant 0 : index
    %c0_12 = arith.constant 0 : index
    %23 = vector.load %arg5[%c0_11, %c0_12] : memref<8x128xf32, #tpu.memory_space<vmem>>, vector<8x128xf32>
    tpu.vector_store %arg5[%c0_11, %c0_12], %22 {strides = array<i32>} : memref<8x128xf32, #tpu.memory_space<vmem>>, vector<8x128xf32>,
    return
  }
}

</mosaic_0001>

<bundles_post_ra>
// kernel: tpu_custom_call.1
= control target key start
LH: loop header
LB: loop body
LE: loop exit
PB: predicated region body
PF: predicated region fallthrough
CT: control target
= control target key end

     0   :  { %10 = vsyncpa [#allocation3], 0  ;;  %s385_s0 = inlined_call_operand.vmem [shape: f32[8,1], index: 0, kind: input, shape index: {}]   ;;  %s386_s1 = inlined_call_operand.vmem [shape: f32[1,128], index: 1, kind: input, shape index: {}]   ;;  %s387_s2 = inlined_call_operand.vmem [shape: f32[1,128], index: 2, kind: input, shape index: {}]   ;;  %s388_s3 = inlined_call_operand.hbm [shape: bf16[128,128], index: 3, kind: input, shape index: {}]   ;;  %s389_s4 = inlined_call_operand.vmem [shape: f32[1,128], index: 4, kind: input, shape index: {}]   ;;  %s390_s5 = inlined_call_operand.hbm [shape: f32[8,128], index: 5, kind: output, shape index: {}]  }
   0x1   :  { %11 = vsyncpa [#allocation4], 0  ;;  %s312_s18 = smov [#allocation2]   ;;  %s264_s22 = scalar_lea.hbm %s388_s3, 1024 }
   0x2   :  { %s23_s19 = sshll.u32 %s312_s18, 4  ;;  %p265_p0 = scmp.ne.s32.totalorder %s388_s3, %s264_s22  ;;  %s24_s19 = int_to_ptr.vmem [resolvable:$true] %s23_s19 }
   0x3   :  { %p268_p1 = scmp.lt.u32.totalorder %s264_s22, %s388_s3 }
   0x5   :  { %p270_p2 = pnand %p268_p1, %p265_p0 }
   0x7   :  { %273 = shalt.err (!%p270_p2)
}
   0x8   :  { %s274_s27 = scalar_lea.vmem %s24_s19, 1024  ;;  %p279_p4 = scmp.lt.s32.totalorder %s24_s19, %s24_s19 }
   0x9   :  { %p275_p3 = scmp.ne.s32.totalorder %s24_s19, %s274_s27  ;;  %p280_p5 = scmp.lt.s32.totalorder %s274_s27, %s274_s27 }
   0xb   :  { %p281_p6 = por %p280_p5, %p279_p4 }
   0xd   :  { %p282_p7 = pnand %p281_p6, %p275_p3 }
   0xf   :  { %285 = shalt.err (!%p282_p7)
}
  0x10   :  { %s313_s28 = smov 64   ;;  %s314_s29 = smov 4  }
  0x11   :  { %29 = dma.hbm_to_vmem [thread:$0]  %s388_s3, 1024, %s24_s19, [#allocation3], %s313_s28, %s313_s28, %s314_s29  }
  0x12   :  { %308 = dma.done.wait [#allocation3], 1024  }
  0x13   :  { %309 = vsyncadd [#allocation3], 4294966272  ;;  %v315_v0 = vmov 0   ;;  %v36_v1 = vld [vmem:[%s385_s0] sm:$0xff]  ;;  %v316_v3 = vmov 0.0   ;;  %v251_v4 = vld [vmem:[#allocation2 + $0x8] sm:$0xff]  }
  0x14   :  { %249 = vset.pattern.permute.xlu0 %v315_v0  ;;  %v250_v2 = vld [vmem:[#allocation2] sm:$0xff]   ;;  %222 = vmatprep.subr.bf16.mxu0 %v316_v3  ;;  %v252_v5 = vld [vmem:[#allocation2 + $0x10] sm:$0xff]   ;;  %v253_v6 = vld [vmem:[#allocation2 + $0x18] sm:$0xff]   ;;  %vm317_vm0 = vmmov 0   ;;  %s318_s11 = smov [#allocation5]  }
  0x15   :  { %40 = vperm.xlu0 %249, %v36_v1   ;;  %223 = vmatpush3.bf16.msra.mxu0 %v250_v2  ;;  %v254_v7 = vld [vmem:[#allocation2 + $0x20] sm:$0xff]   ;;  %v255_v8 = vld [vmem:[#allocation2 + $0x28] sm:$0xff]   ;;  %v256_v9 = vld [vmem:[#allocation2 + $0x30] sm:$0xff]   ;;  %s193_s12 = sshll.u32 %s318_s11, 4  ;;  %s194_s12 = int_to_ptr.vmem [resolvable:$true] %s193_s12 }
  0x16   :  { %224 = vmatprep.subr.bf16.mxu0 %v316_v3  ;;  %238 = vmatprep.mubr.msk.bf16.mxu0 %vm317_vm0, %v316_v3  ;;  %v257_v10 = vld [vmem:[#allocation2 + $0x38] sm:$0xff]   ;;  %v202_v11 = vld [vmem:[%s386_s1] ss:$0 sm:$0xff]  ;;  %s286_s13 = scalar_lea.vmem %s194_s12, 128  ;;  %p291_p9 = scmp.lt.s32.totalorder %s194_s12, %s194_s12 }
  0x17   :  { %v203_v12 = vld [vmem:[%s387_s2] ss:$0 sm:$0xff]  ;;  %p287_p8 = scmp.ne.s32.totalorder %s194_s12, %s286_s13  ;;  %p292_p10 = scmp.lt.s32.totalorder %s286_s13, %s286_s13 }
  0x18   :  { %v204_v31 = vld [vmem:[%s389_s4] ss:$0 sm:$0xff] }
  0x19   :  { %225 = vmatpush3.bf16.msra.mxu0 %v251_v4  ;;  %p293_p11 = por %p292_p10, %p291_p9 }
  0x1a   :  { %226 = vmatprep.subr.bf16.mxu0 %v316_v3 }
  0x1b   :  { %p294_p12 = pnand %p293_p11, %p287_p8 }
  0x1d   :  { %227 = vmatpush3.bf16.msra.mxu0 %v252_v5 }
  0x1e   :  { %228 = vmatprep.subr.bf16.mxu0 %v316_v3 }
  0x21   :  { %229 = vmatpush3.bf16.msra.mxu0 %v253_v6 }
  0x22   :  { %230 = vmatprep.subr.bf16.mxu0 %v316_v3 }
  0x25   :  { %231 = vmatpush3.bf16.msra.mxu0 %v254_v7 }
  0x26   :  { %232 = vmatprep.subr.bf16.mxu0 %v316_v3 }
  0x29   :  { %233 = vmatpush3.bf16.msra.mxu0 %v255_v8 }
  0x2a   :  { %234 = vmatprep.subr.bf16.mxu0 %v316_v3 }
  0x2d   :  { %235 = vmatpush3.bf16.msra.mxu0 %v256_v9 }
  0x2e   :  { %236 = vmatprep.subr.bf16.mxu0 %v316_v3 }
  0x31   :  { %237 = vmatpush3.bf16.msra.mxu0 %v257_v10 }
  0x94   :  { %v41_v13 = vpop.permute.xlu0 %40 }
  0x95   :  { %v49_v14 = vmul.f32 %v202_v11, %v41_v13 }
  0x97   :  { %v57_v15 = vadd.f32 %v203_v12, %v49_v14 }
  0x99   :  { %v59_v16 = vmin.f32 %v57_v15, 20.0  ;;  %vm58_vm2 = vcmp.gt.f32.partialorder %v57_v15, 20.0 }
  0x9b   :  { %v60_v17 = vmul.f32 1.442695, %v59_v16 }
  0x9d   :  { %258 = vpow2.f32 %v60_v17 }
  0xa7   :  { %v259_v18 = vpop.eup %258 }
  0xa8   :  { %v62_v19 = vadd.f32 1.0, %v259_v18  ;;  %v65_v20 = vmul.f32 -0.5, %v259_v18  ;;  %v68_v22 = vand.u32 2147483647, %v259_v18 }
  0xaa   :  { %260 = vlog2.f32 %v62_v19  ;;  %v66_v21 = vadd.f32 1.0, %v65_v20  ;;  %vm69_vm1 = vcmp.lt.f32.partialorder %v68_v22, 0.0004427343 }
  0xac   :  { %v67_v25 = vmul.f32 %v259_v18, %v66_v21 }
  0xb4   :  { %v261_v23 = vpop.eup %260 }
  0xb5   :  { %v64_v24 = vmul.f32 0.6931472, %v261_v23 }
  0xb7   :  { %v70_v26 = vsel %vm69_vm1, %v67_v25, %v64_v24 }
  0xb8   :  { %v71_v27 = vsel %vm58_vm2, %v57_v15, %v70_v26 }
  0xb9   :  { %262 = vtanh.f32 %v71_v27 }
  0xc3   :  { %v263_v28 = vpop.eup %262 }
  0xc4   :  { %v73_v29 = vmul.f32 %v263_v28, %v57_v15 }
  0xc6   :  { %v74_v30 = vpack.c.bf16 %v73_v29, %v73_v29 }
  0xc8   :  { %239 = vmatmul.mubr.bf16.vlgmr.msra.gmra.mrb[0].mxu0 %v74_v30 }
 0x19b   :  { %v180_v32 = vpop.f32.mrb[0].mxu0 }
 0x19c   :  { %v181_v33 = vadd.f32 %v204_v31, %v180_v32  ;;  %v240_v34 = vpop.f32.mrb[1].mxu0 }
 0x19d   :  { %v183_v35 = vpop.f32.mrb[2].mxu0 }
 0x19e   :  { %186 = vst [vmem:[#allocation5] sm:$0xff] %v181_v33  ;;  %v241_v36 = vpop.f32.mrb[3].mxu0 }
 0x19f   :  { %297 = shalt.err (!%p294_p12)
}
 0x1a0   :  { %s298_s4 = scalar_lea.hbm %s390_s5, 128 }
 0x1a1   :  { %p299_p13 = scmp.ne.s32.totalorder %s390_s5, %s298_s4  ;;  %p302_p0 = scmp.lt.u32.totalorder %s298_s4, %s390_s5 }
 0x1a3   :  { %p304_p1 = pnand %p302_p0, %p299_p13 }
 0x1a5   :  { %307 = shalt.err (!%p304_p1)
}
 0x1a6   :  { %196 = dma.vmem_to_hbm [thread:$0]  %s194_s12, 128, %s390_s5, [#allocation4]  }
 0x1a7   :  { %310 = dma.done.wait [#allocation4], 128  }
 0x1a8   :  { %311 = vsyncadd [#allocation4], 4294967168 }
 0x1a9   :  { %200 = vsyncpa [#allocation3], 1 }
 0x1aa   :  { %201 = vsyncpa [#allocation4], 1 }

</bundles_post_ra>
